<compile_context>
chip_gen: v7x
topology: tpu7x:2x2x1
jax: 0.10.0
libtpu: 0.0.40
codegen_flags: <defaults>
</compile_context>

<pallas_src>
import functools

import jax
import jax.numpy as jnp
from jax.experimental import pallas as pl
from jax.experimental.pallas import tpu as pltpu


def _round_up(n, m):
    return ((n + m - 1) // m) * m


def _vmem_capacity_bytes():
    try:
        return int(pltpu.get_tpu_info().vmem_capacity_bytes)
    except Exception:  # interpret mode / older runtimes
        return 64 * 1024 * 1024


def _num_tensorcores():
    """Best-effort TensorCores-per-chip detection (2 on v7x, 1 on v5e/v6e)."""
    try:
        info = pltpu.get_tpu_info()
        for attr in ("num_cores", "num_tensorcores", "tensorcores_per_chip",
                     "cores_per_chip", "core_count"):
            val = getattr(info, attr, None)
            if val:
                return max(1, int(val))
    except Exception:
        pass
    try:
        if "v7" in jax.devices()[0].device_kind.lower():
            return 2
    except Exception:
        pass
    return 1


def _lm_crit_kernel(x_ref, tgt_ref, mask_ref, out_ref, acc_ref, *,
                    compute_entropy):
    """Grid = (partition, row-block).

    acc_ref is a single packed (tile_n, 128) f32 accumulator: lane0=loss,
    lane1=entropy, lane2=mask.  One unmasked RMW per step; the cross-sublane
    reduce + store happens once, on the last step of each partition, into a
    lane-dense (1, 8, 128) output block.
    """
    i = pl.program_id(1)

    @pl.when(i == 0)
    def _init():
        acc_ref[...] = jnp.zeros_like(acc_ref)

    # Upcast per tile: x streams from HBM in its native dtype (e.g. bf16);
    # all math stays f32 (required on v5e: no bf16 VPU/EUP).
    x = x_ref[...].astype(jnp.float32)     # (TN, V)
    tgt = tgt_ref[...]                      # (TN, 1) i32 (zero on padded rows)
    m = mask_ref[...]                       # (TN, 1) f32 (zero on padded rows)
    valid = m > 0.0

    # Gather x[i, target[i]] via select.  Row-level select (not multiply)
    # below guarantees garbage tail rows of a ragged block never inject
    # NaN/inf into the accumulators.
    col = jax.lax.broadcasted_iota(jnp.int32, x.shape, 1)
    picked = jnp.sum(jnp.where(col == tgt, x, 0.0), axis=-1, keepdims=True)
    loss_row = jnp.where(valid, -picked * m, 0.0)            # (TN, 1)

    if compute_entropy:
        # NOTE: exp(x)*x is NaN for x == -inf; this matches the PyTorch
        # reference (no guard).  Garbage rows are discarded by `valid`.
        ent_row = -jnp.sum(jnp.exp(x) * x, axis=-1, keepdims=True)
        ent_row = jnp.where(valid, ent_row * m, 0.0)
    else:
        ent_row = jnp.zeros_like(loss_row)

    lane = jax.lax.broadcasted_iota(jnp.int32, acc_ref.shape, 1)
    contrib = jnp.where(lane == 0, loss_row,
              jnp.where(lane == 1, ent_row,
              jnp.where(lane == 2, m, 0.0)))
    acc_ref[...] += contrib

    @pl.when(i == pl.num_programs(1) - 1)
    def _finalize():
        totals = jnp.sum(acc_ref[...], axis=0, keepdims=True)   # (1, 128)
        out_ref[...] = jnp.broadcast_to(totals[None],
                                        out_ref.shape).astype(out_ref.dtype)


def language_model_criterion(x, target, weight=0.0, tile_n=None,
                             num_partitions=None, force_pallas=False):
    """Equivalent of LanguageModelCriterion(weight)(x, target) with
    weights=None, compute_prob=False.  Returns a scalar."""
    # TODO(synk): per-token `weights` scaling and the compute_prob=True
    # per-sequence path are not implemented (weights=None / compute_prob=False
    # only).
    if target.ndim == 3:
        x = x.reshape(-1, x.shape[2], x.shape[3])
        target = target.reshape(-1, target.shape[2])

    B, T, V = x.shape
    target = target[:, :T]

    # shifted mask: col 0 is always 1, col t uses (target[:, t-1] > 0)
    mask = (target > 0).astype(jnp.float32)
    mask = jnp.concatenate([jnp.ones((B, 1), jnp.float32), mask[:, :-1]],
                           axis=1)

    # x stays in its NATIVE dtype (no f32 copy in HBM); the kernel upcasts
    # per tile.
    xf = x.reshape(-1, V)
    tf = target.reshape(-1, 1).astype(jnp.int32)
    mf = mask.reshape(-1, 1)
    N = xf.shape[0]

    # weight is usually a Python float set at module construction time.
    # (A traced/array weight always takes the full entropy path.)
    compute_entropy = not (isinstance(weight, (int, float))
                           and float(weight) == 0.0)

    if not compute_entropy and not force_pallas:
        # Fast path: NLL-only needs exactly one element per row, so don't
        # stream the whole (N, V) matrix; a tiny XLA gather suffices.
        picked = jnp.take_along_axis(xf, tf, axis=1).astype(jnp.float32)
        return jnp.sum(-picked * mf) / jnp.sum(mf)

    vmem_cap = _vmem_capacity_bytes()
    itemsize = jnp.dtype(xf.dtype).itemsize
    row_align = 16 if itemsize < 4 else 8

    if tile_n is None:
        # Per-row VMEM footprint: double-buffered x block (native dtype),
        # ~4 full-width f32 in-kernel temporaries (upcast x, iota, masked
        # select, exp(x)*x), the packed (row, 128) accumulator, and the tiny
        # tgt/mask blocks.
        bytes_per_row = (2 * V * itemsize    # x double buffer
                         + 4 * V * 4         # f32 elementwise temporaries
                         + 128 * 4           # packed accumulator
                         + 64)               # tgt/mask double buffers
        budget = vmem_cap // 2
        tile_cap = max(row_align,
                       (budget // bytes_per_row) // row_align * row_align)

        # Byte-based streaming-block target (no row cap): multi-MiB DMAs are
        # needed to reach the HBM roofline; smaller target on the 64 MiB-VMEM
        # chips (v7x).
        block_target = (4 << 20) if vmem_cap <= (64 << 20) else (8 << 20)
        rows_target = max(row_align,
                          (block_target // max(1, V * itemsize))
                          // row_align * row_align)
        tile_n = min(tile_cap, rows_target, _round_up(N, row_align))
    tile_n = max(row_align, (tile_n // row_align) * row_align)

    nblk = -(-N // tile_n)                    # real row-blocks
    # Generation-aware partitioning: one partition per TensorCore (2 on v7x,
    # 1 on v5e/v6e), never more partitions than real blocks.
    P = (_num_tensorcores() if num_partitions is None
         else max(1, int(num_partitions)))
    P = max(1, min(P, nblk))
    bpp = -(-nblk // P)                       # blocks per partition
    Ng = P * bpp * tile_n                     # full grid row extent

    # Pad ONLY the tiny target/mask columns (zeros => no contribution);
    # x is read in place, never padded or copied.
    pad = Ng - N
    if pad:
        tf = jnp.pad(tf, ((0, pad), (0, 0)))
        mf = jnp.pad(mf, ((0, pad), (0, 0)))

    # x block index clamped to the last real block so no block is ever fully
    # out of bounds; phantom / ragged rows contribute nothing (mask is 0).
    def x_map(p, i):
        return (jnp.minimum(p * bpp + i, nblk - 1), 0)

    def tm_map(p, i):
        return (p * bpp + i, 0)

    # Scoped-VMEM limit covering blocks, scratch AND in-kernel temporaries.
    needed = (2 * tile_n * V * itemsize       # double-buffered x blocks
              + 4 * tile_n * V * 4            # f32 elementwise temporaries
              + tile_n * 128 * 4              # packed accumulator scratch
              + 2 * 2 * tile_n * 8            # tgt + mask blocks
              + 2 * 8 * 128 * 4               # output block
              + (2 << 20))                    # slack
    vmem_limit = min(max(needed, 32 * 1024 * 1024), int(vmem_cap * 0.9))

    out_shape = jax.ShapeDtypeStruct((P, 8, 128), jnp.float32)

    res = pl.pallas_call(
        functools.partial(_lm_crit_kernel, compute_entropy=compute_entropy),
        out_shape=out_shape,
        grid_spec=pltpu.PrefetchScalarGridSpec(
            num_scalar_prefetch=0,
            grid=(P, bpp),
            in_specs=[
                pl.BlockSpec((tile_n, V), x_map),
                pl.BlockSpec((tile_n, 1), tm_map),
                pl.BlockSpec((tile_n, 1), tm_map),
            ],
            out_specs=pl.BlockSpec((1, 8, 128), lambda p, i: (p, 0, 0)),
            scratch_shapes=[
                pltpu.VMEM((tile_n, 128), jnp.float32),  # packed accumulator
            ],
        ),
        compiler_params=pltpu.CompilerParams(
            dimension_semantics=("parallel", "arbitrary"),
            vmem_limit_bytes=int(vmem_limit),
        ),
    )(xf, tf, mf)

    sums = jnp.sum(res[:, 0, :], axis=0)      # (128,) partition-summed partials
    loss_s, ent_s, mask_s = sums[0], sums[1], sums[2]

    out = loss_s / mask_s
    if compute_entropy:
        out = out + jnp.float32(weight) * (ent_s / mask_s)
    return out


def _reference(x, target, weight=0.0):
    """Pure-JAX reference mirroring the PyTorch forward."""
    B, T, V = x.shape
    target = target[:, :T]
    mask = (target > 0).astype(jnp.float32)
    mask = jnp.concatenate([jnp.ones((B, 1), jnp.float32), mask[:, :-1]], 1)
    xf = x.reshape(-1, V).astype(jnp.float32)
    tf = target.reshape(-1)
    mf = mask.reshape(-1)
    picked = jnp.take_along_axis(xf, tf[:, None], axis=1)[:, 0]
    output = jnp.sum(-picked * mf) / jnp.sum(mf)
    ent = jnp.sum(-(jnp.exp(xf) * xf).sum(-1) * mf) / jnp.sum(mf)
    return output + weight * ent


if __name__ == "__main__":
    key = jax.random.PRNGKey(0)
    k1, k2, k3, k4 = jax.random.split(key, 4)

    # --- case 1: f32, weight != 0 (entropy path), B*T multiple of 8 ---
    B, T, V = 2, 8, 32
    weight = 0.1
    logits = jax.random.normal(k1, (B, T, V), dtype=jnp.float32)
    x = jax.nn.log_softmax(logits, axis=-1)
    target = jax.random.randint(k2, (B, T), minval=0, maxval=V, dtype=jnp.int32)
    target = target.at[0, T - 2:].set(0).at[1, T - 3:].set(0)

    r1 = jax.block_until_ready(language_model_criterion(x, target, weight=weight))
    ref1 = _reference(x, target, weight=weight)
    assert jnp.allclose(r1, ref1, rtol=1e-5, atol=1e-5), (r1, ref1)

    # --- case 2: bf16 x passed through natively, ragged N=15, entropy on ---
    B2, T2, V2 = 3, 5, 128
    logits2 = jax.random.normal(k3, (B2, T2, V2), dtype=jnp.float32)
    x2 = jax.nn.log_softmax(logits2, axis=-1).astype(jnp.bfloat16)
    target2 = jax.random.randint(k4, (B2, T2), minval=0, maxval=V2,
                                 dtype=jnp.int32)
    target2 = target2.at[0, T2 - 2:].set(0)

    r2 = jax.block_until_ready(language_model_criterion(x2, target2, weight=0.05))
    ref2 = _reference(x2, target2, weight=0.05)
    assert jnp.allclose(r2, ref2, rtol=1e-4, atol=1e-4), (r2, ref2)

    # --- case 3: weight == 0 -> NLL-only gather fast path (no full-x stream) ---
    r3 = jax.block_until_ready(language_model_criterion(x, target, weight=0.0))
    ref3 = _reference(x, target, weight=0.0)
    assert jnp.allclose(r3, ref3, rtol=1e-5, atol=1e-5), (r3, ref3)

    # --- case 4: weight == 0 but Pallas kernel forced (entropy work skipped) ---
    r4 = jax.block_until_ready(
        language_model_criterion(x2, target2, weight=0.0, force_pallas=True))
    ref4 = _reference(x2, target2, weight=0.0)
    assert jnp.allclose(r4, ref4, rtol=1e-4, atol=1e-4), (r4, ref4)

    print("KERNEL_OK")
</pallas_src>

<mosaic_0001>
module attributes {stable_mosaic.version = 11 : i64} {
  func.func @_lm_crit_kernel(%arg0: i32, %arg1: i32, %arg2: memref<16x32xf32, #tpu.memory_space<vmem>>, %arg3: memref<16x1xi32, #tpu.memory_space<vmem>>, %arg4: memref<16x1xf32, #tpu.memory_space<vmem>>, %arg5: memref<1x8x128xf32, #tpu.memory_space<vmem>>, %arg6: memref<16x128xf32, #tpu.memory_space<vmem>>) attributes {dimension_semantics = [#tpu.dimension_semantics<parallel>, #tpu.dimension_semantics<arbitrary>], iteration_bounds = array<i64: 1, 1>, scalar_prefetch = 0 : i64, scratch_operands = 1 : i64, tpu.core_type = #tpu.core_type<tc>, window_params = [{transform_indices = @transform_0, window_bounds = array<i64: 16, 32>}, {transform_indices = @transform_1, window_bounds = array<i64: 16, 1>}, {transform_indices = @transform_2, window_bounds = array<i64: 16, 1>}, {transform_indices = @transform_3, window_bounds = array<i64: 1, 8, 128>}]} {
    %c0_i32 = arith.constant 0 : i32
    %0 = arith.cmpi eq, %arg1, %c0_i32 : i32
    %1 = arith.extui %0 : i1 to i32
    %c0_i32_0 = arith.constant 0 : i32
    %2 = arith.cmpi ne, %1, %c0_i32_0 : i32
    scf.if %2 {
      %cst_21 = arith.constant 0.000000e+00 : f32
      %52 = vector.broadcast %cst_21 : f32 to vector<16x128xf32>
      %c0_22 = arith.constant 0 : index
      %c0_23 = arith.constant 0 : index
      %53 = vector.load %arg6[%c0_22, %c0_23] : memref<16x128xf32, #tpu.memory_space<vmem>>, vector<16x128xf32>
      tpu.vector_store %arg6[%c0_22, %c0_23], %52 {strides = array<i32>} : memref<16x128xf32, #tpu.memory_space<vmem>>, vector<16x128xf32>,
    } else {
    }
    %c0 = arith.constant 0 : index
    %c0_1 = arith.constant 0 : index
    %3 = vector.load %arg2[%c0, %c0_1] : memref<16x32xf32, #tpu.memory_space<vmem>>, vector<16x32xf32>
    %c0_2 = arith.constant 0 : index
    %c0_3 = arith.constant 0 : index
    %4 = vector.load %arg3[%c0_2, %c0_3] : memref<16x1xi32, #tpu.memory_space<vmem>>, vector<16x1xi32>
    %c0_4 = arith.constant 0 : index
    %c0_5 = arith.constant 0 : index
    %5 = vector.load %arg4[%c0_4, %c0_5] : memref<16x1xf32, #tpu.memory_space<vmem>>, vector<16x1xf32>
    %cst = arith.constant 0.000000e+00 : f32
    %6 = vector.broadcast %cst : f32 to vector<16x1xf32>
    %7 = arith.cmpf ogt, %5, %6 : vector<16x1xf32>
    %8 = tpu.iota {dimensions = array<i32: 1>} : vector<16x32xi32>
    %9 = vector.broadcast %4 : vector<16x1xi32> to vector<16x32xi32>
    %10 = arith.cmpi eq, %8, %9 : vector<16x32xi32>
    %cst_6 = arith.constant 0.000000e+00 : f32
    %11 = vector.broadcast %cst_6 : f32 to vector<16x32xf32>
    %12 = arith.select %10, %3, %11 : vector<16x32xi1>, vector<16x32xf32>
    %cst_7 = arith.constant dense<0.000000e+00> : vector<16xf32>
    %13 = vector.multi_reduction <add>, %12, %cst_7 [1] : vector<16x32xf32> to vector<16xf32>
    %14 = vector.shape_cast %13 : vector<16xf32> to vector<16x1xf32>
    %cst_8 = arith.constant 0.000000e+00 : f32
    %15 = vector.broadcast %cst_8 : f32 to vector<16x1xf32>
    %16 = arith.subf %15, %14 : vector<16x1xf32>
    %17 = arith.mulf %16, %5 : vector<16x1xf32>
    %cst_9 = arith.constant 0.000000e+00 : f32
    %18 = vector.broadcast %cst_9 : f32 to vector<16x1xf32>
    %19 = arith.select %7, %17, %18 : vector<16x1xi1>, vector<16x1xf32>
    %20 = math.exp %3 : vector<16x32xf32>
    %21 = arith.mulf %20, %3 : vector<16x32xf32>
    %cst_10 = arith.constant dense<0.000000e+00> : vector<16xf32>
    %22 = vector.multi_reduction <add>, %21, %cst_10 [1] : vector<16x32xf32> to vector<16xf32>
    %23 = vector.shape_cast %22 : vector<16xf32> to vector<16x1xf32>
    %cst_11 = arith.constant 0.000000e+00 : f32
    %24 = vector.broadcast %cst_11 : f32 to vector<16x1xf32>
    %25 = arith.subf %24, %23 : vector<16x1xf32>
    %26 = arith.mulf %25, %5 : vector<16x1xf32>
    %cst_12 = arith.constant 0.000000e+00 : f32
    %27 = vector.broadcast %cst_12 : f32 to vector<16x1xf32>
    %28 = arith.select %7, %26, %27 : vector<16x1xi1>, vector<16x1xf32>
    %29 = tpu.iota {dimensions = array<i32: 1>} : vector<16x128xi32>
    %c0_i32_13 = arith.constant 0 : i32
    %30 = vector.broadcast %c0_i32_13 : i32 to vector<16x128xi32>
    %31 = arith.cmpi eq, %29, %30 : vector<16x128xi32>
    %c1_i32 = arith.constant 1 : i32
    %32 = vector.broadcast %c1_i32 : i32 to vector<16x128xi32>
    %33 = arith.cmpi eq, %29, %32 : vector<16x128xi32>
    %c2_i32 = arith.constant 2 : i32
    %34 = vector.broadcast %c2_i32 : i32 to vector<16x128xi32>
    %35 = arith.cmpi eq, %29, %34 : vector<16x128xi32>
    %cst_14 = arith.constant 0.000000e+00 : f32
    %36 = vector.shape_cast %5 : vector<16x1xf32> to vector<16x1xf32>
    %37 = vector.broadcast %36 : vector<16x1xf32> to vector<16x128xf32>
    %38 = vector.broadcast %cst_14 : f32 to vector<16x128xf32>
    %39 = arith.select %35, %37, %38 : vector<16x128xi1>, vector<16x128xf32>
    %40 = vector.shape_cast %28 : vector<16x1xf32> to vector<16x1xf32>
    %41 = vector.broadcast %40 : vector<16x1xf32> to vector<16x128xf32>
    %42 = arith.select %33, %41, %39 : vector<16x128xi1>, vector<16x128xf32>
    %43 = vector.shape_cast %19 : vector<16x1xf32> to vector<16x1xf32>
    %44 = vector.broadcast %43 : vector<16x1xf32> to vector<16x128xf32>
    %45 = arith.select %31, %44, %42 : vector<16x128xi1>, vector<16x128xf32>
    %c0_15 = arith.constant 0 : index
    %c0_16 = arith.constant 0 : index
    %46 = vector.load %arg6[%c0_15, %c0_16] : memref<16x128xf32, #tpu.memory_space<vmem>>, vector<16x128xf32>
    %47 = arith.addf %46, %45 : vector<16x128xf32>
    %c0_17 = arith.constant 0 : index
    %c0_18 = arith.constant 0 : index
    %48 = vector.load %arg6[%c0_17, %c0_18] : memref<16x128xf32, #tpu.memory_space<vmem>>, vector<16x128xf32>
    tpu.vector_store %arg6[%c0_17, %c0_18], %47 {strides = array<i32>} : memref<16x128xf32, #tpu.memory_space<vmem>>, vector<16x128xf32>,
    %c0_i32_19 = arith.constant 0 : i32
    %49 = arith.cmpi eq, %arg1, %c0_i32_19 : i32
    %50 = arith.extui %49 : i1 to i32
    %c0_i32_20 = arith.constant 0 : i32
    %51 = arith.cmpi ne, %50, %c0_i32_20 : i32
    scf.if %51 {
      %c0_21 = arith.constant 0 : index
      %c0_22 = arith.constant 0 : index
      %52 = vector.load %arg6[%c0_21, %c0_22] : memref<16x128xf32, #tpu.memory_space<vmem>>, vector<16x128xf32>
      %cst_23 = arith.constant dense<0.000000e+00> : vector<128xf32>
      %53 = vector.multi_reduction <add>, %52, %cst_23 [0] : vector<16x128xf32> to vector<128xf32>
      %54 = vector.shape_cast %53 : vector<128xf32> to vector<1x128xf32>
      %55 = vector.shape_cast %54 : vector<1x128xf32> to vector<1x1x128xf32>
      %56 = vector.shape_cast %55 : vector<1x1x128xf32> to vector<1x1x128xf32>
      %57 = vector.broadcast %56 : vector<1x1x128xf32> to vector<1x8x128xf32>
      %c0_24 = arith.constant 0 : index
      %c0_25 = arith.constant 0 : index
      %c0_26 = arith.constant 0 : index
      %58 = vector.load %arg5[%c0_24, %c0_25, %c0_26] : memref<1x8x128xf32, #tpu.memory_space<vmem>>, vector<1x8x128xf32>
      tpu.vector_store %arg5[%c0_24, %c0_25, %c0_26], %57 {strides = array<i32>} : memref<1x8x128xf32, #tpu.memory_space<vmem>>, vector<1x8x128xf32>,
    } else {
    }
    return
  }
  func.func @transform_0(%arg0: i32, %arg1: i32) -> (i32, i32) {
    %c1_i32 = arith.constant 1 : i32
    %0 = arith.muli %arg0, %c1_i32 : i32
    %1 = arith.addi %0, %arg1 : i32
    %c0_i32 = arith.constant 0 : i32
    %2 = arith.minsi %1, %c0_i32 : i32
    %c0_i32_0 = arith.constant 0 : i32
    %c0_i32_1 = arith.constant 0 : i32
    return %2, %c0_i32_0 : i32, i32
  }
  func.func @transform_1(%arg0: i32, %arg1: i32) -> (i32, i32) {
    %c1_i32 = arith.constant 1 : i32
    %0 = arith.muli %arg0, %c1_i32 : i32
    %1 = arith.addi %0, %arg1 : i32
    %c0_i32 = arith.constant 0 : i32
    %c0_i32_0 = arith.constant 0 : i32
    return %1, %c0_i32 : i32, i32
  }
  func.func @transform_2(%arg0: i32, %arg1: i32) -> (i32, i32) {
    %c1_i32 = arith.constant 1 : i32
    %0 = arith.muli %arg0, %c1_i32 : i32
    %1 = arith.addi %0, %arg1 : i32
    %c0_i32 = arith.constant 0 : i32
    %c0_i32_0 = arith.constant 0 : i32
    return %1, %c0_i32 : i32, i32
  }
  func.func @transform_3(%arg0: i32, %arg1: i32) -> (i32, i32, i32) {
    %c0_i32 = arith.constant 0 : i32
    %c0_i32_0 = arith.constant 0 : i32
    %c0_i32_1 = arith.constant 0 : i32
    return %arg0, %c0_i32, %c0_i32_0 : i32, i32, i32
  }
}

</mosaic_0001>

<bundles_post_ra>
// kernel: tpu_custom_call.1
= control target key start
LH: loop header
LB: loop body
LE: loop exit
PB: predicated region body
PF: predicated region fallthrough
CT: control target
= control target key end

     0   :  { %v270_v2 = vmov 0   ;;  %s326_s0 = inlined_call_operand.vmem [shape: f32[16,32], index: 0, kind: input, shape index: {}]   ;;  %s327_s1 = inlined_call_operand.vmem [shape: s32[16,1], index: 1, kind: input, shape index: {}]   ;;  %s328_s2 = inlined_call_operand.vmem [shape: f32[16,1], index: 2, kind: input, shape index: {}]   ;;  %s329_s3 = inlined_call_operand.hbm [shape: f32[1,8,128], index: 3, kind: output, shape index: {}]  }
   0x1   :  { %v99_v0 = vld [vmem:[%s327_s1] sm:$0xff]  ;;  %240 = vset.pattern.permute.xlu0 %v270_v2  ;;  %v98_v4 = vld [vmem:[%s326_s0 + $0x8] sm:$0xff]  ;;  %241 = vset.pattern.permute.xlu1 %v270_v2 }
   0x2   :  { %v97_v1 = vld [vmem:[%s326_s0] sm:$0xff] }
   0x3   :  { %v130_v3 = vmul.f32 1.442695, %v97_v1 }
   0x4   :  { %8 = vsyncpa [#allocation4], 0  ;;  %108 = vperm.xlu0 %240, %v99_v0   ;;  %v132_v5 = vmul.f32 1.442695, %v98_v4  ;;  %v100_v6 = vld [vmem:[%s327_s1 + $0x8] sm:$0xff]  ;;  %vm117_vm0 = vcmask 261120   ;;  %v105_v13 = vlaneseq }
   0x5   :  { %242 = vpow2.f32 %v130_v3  ;;  %v101_v21 = vld [vmem:[%s328_s2] sm:$0xff]  ;;  %v102_v22 = vld [vmem:[%s328_s2 + $0x8] sm:$0xff]  ;;  %s271_s2 = smov [#allocation3]  }
   0x6   :  { %244 = vpow2.f32 %v132_v5  ;;  %v106_v14 = vand.u32 127, %v105_v13  ;;  %vm103_vm3 = vcmp.gt.f32.partialorder %v101_v21, 0.0  ;;  %vm104_vm4 = vcmp.gt.f32.partialorder %v102_v22, 0.0  ;;  %s212_s22 = sshll.u32 %s271_s2, 4  ;;  %s213_s22 = int_to_ptr.vmem [resolvable:$true] %s212_s22 }
   0x7   :  { %s246_s23 = scalar_lea.vmem %s213_s22, 128  ;;  %p251_p1 = scmp.lt.s32.totalorder %s213_s22, %s213_s22 }
   0x8   :  { %111 = vperm.xlu0 %240, %v100_v6   ;;  %vm150_vm5 = vcmp.eq.s32.totalorder %v106_v14, 2  ;;  %vm149_vm6 = vcmp.eq.s32.totalorder %v106_v14, 1  ;;  %vm148_vm7 = vcmp.eq.s32.totalorder %v106_v14, 0  ;;  %p247_p0 = scmp.ne.s32.totalorder %s213_s22, %s246_s23  ;;  %p252_p2 = scmp.lt.s32.totalorder %s246_s23, %s246_s23 }
   0xa   :  { %p253_p3 = por %p252_p2, %p251_p1 }
   0xc   :  { %p254_p4 = pnand %p253_p3, %p247_p0 }
   0xf   :  { %v243_v7 = vpop.eup %242 }
  0x10   :  { %v245_v8 = vpop.eup %244  ;;  %v134_v9 = vmul.f32 %v243_v7, %v97_v1 }
  0x11   :  { %v135_v10 = vmul.f32 %v245_v8, %v98_v4 }
  0x12   :  { %v136_v11 = vsel %vm117_vm0, %v134_v9, 0.0 }
  0x13   :  { %137 = vadd.xlane.f32.xlu1 %v136_v11  ;;  %v139_v12 = vsel %vm117_vm0, %v135_v10, 0.0 }
  0x17   :  { %140 = vadd.xlane.f32.xlu1 %v139_v12 }
  0x83   :  { %v109_v15 = vpop.permute.xlu0 %108 }
  0x84   :  { %vm113_vm1 = vcmp.eq.s32.totalorder %v106_v14, %v109_v15 }
  0x85   :  { %v115_v16 = vsel %vm113_vm1, %v97_v1, 0.0 }
  0x86   :  { %v118_v17 = vsel %vm117_vm0, %v115_v16, 0.0 }
  0x87   :  { %v112_v18 = vpop.permute.xlu0 %111  ;;  %119 = vadd.xlane.f32.xlu0 %v118_v17 }
  0x88   :  { %vm114_vm2 = vcmp.eq.s32.totalorder %v106_v14, %v112_v18 }
  0x89   :  { %v116_v19 = vsel %vm114_vm2, %v98_v4, 0.0 }
  0x8a   :  { %v121_v20 = vsel %vm117_vm0, %v116_v19, 0.0 }
  0x8b   :  { %122 = vadd.xlane.f32.xlu1 %v121_v20 }
  0x9c   :  { %153 = vperm.xlu1 %241, %v101_v21  }
  0xa0   :  { %v138_v23 = vpop.xlane.xlu1 %137  ;;  %158 = vperm.xlu1 %241, %v102_v22  }
  0xa1   :  { %v142_v24 = vsub.f32 0.0, %v138_v23 }
  0xa3   :  { %v144_v25 = vmul.f32 %v142_v24, %v101_v21 }
  0xa4   :  { %v141_v26 = vpop.xlane.xlu1 %140 }
  0xa5   :  { %v143_v27 = vsub.f32 0.0, %v141_v26  ;;  %v146_v28 = vsel %vm103_vm3, %v144_v25, 0.0 }
  0xa6   :  { %165 = vperm.xlu1 %241, %v146_v28  }
  0xa7   :  { %v145_v29 = vmul.f32 %v143_v27, %v102_v22 }
  0xa9   :  { %v147_v30 = vsel %vm104_vm4, %v145_v29, 0.0 }
  0xaa   :  { %170 = vperm.xlu1 %241, %v147_v30  }
 0x114   :  { %v120_v31 = vpop.xlane.xlu0 %119 }
 0x115   :  { %v124_v32 = vsub.f32 0.0, %v120_v31 }
 0x117   :  { %v126_v33 = vmul.f32 %v124_v32, %v101_v21 }
 0x118   :  { %v123_v34 = vpop.xlane.xlu1 %122 }
 0x119   :  { %v125_v35 = vsub.f32 0.0, %v123_v34  ;;  %v128_v36 = vsel %vm103_vm3, %v126_v33, 0.0 }
 0x11a   :  { %177 = vperm.xlu0 %240, %v128_v36  }
 0x11b   :  { %v127_v37 = vmul.f32 %v125_v35, %v102_v22 }
 0x11c   :  { %v154_v39 = vpop.permute.xlu1 %153 }
 0x11d   :  { %v129_v38 = vsel %vm104_vm4, %v127_v37, 0.0  ;;  %v161_v43 = vsel %vm150_vm5, %v154_v39, 0.0 }
 0x11e   :  { %182 = vperm.xlu1 %241, %v129_v38  }
 0x120   :  { %v159_v40 = vpop.permute.xlu1 %158 }
 0x121   :  { %v162_v44 = vsel %vm150_vm5, %v159_v40, 0.0 }
 0x125   :  { %v166_v41 = vpop.permute.xlu1 %165 }
 0x126   :  { %v173_v46 = vsel %vm149_vm6, %v166_v41, %v161_v43 }
 0x129   :  { %v171_v42 = vpop.permute.xlu1 %170 }
 0x12a   :  { %v174_v47 = vsel %vm149_vm6, %v171_v42, %v162_v44 }
 0x199   :  { %v178_v45 = vpop.permute.xlu0 %177 }
 0x19a   :  { %v185_v49 = vsel %vm148_vm7, %v178_v45, %v173_v46 }
 0x19d   :  { %v183_v48 = vpop.permute.xlu1 %182 }
 0x19e   :  { %v186_v50 = vsel %vm148_vm7, %v183_v48, %v174_v47 }
 0x19f   :  { %v198_v51 = vadd.f32 %v186_v50, %v185_v49 }
 0x1a1   :  { %v199_v52 = vrot.slane %v198_v51, 4 }
 0x1a3   :  { %v200_v53 = vadd.f32 %v199_v52, %v198_v51 }
 0x1a5   :  { %v201_v54 = vrot.slane %v200_v53, 2 }
 0x1a7   :  { %v202_v55 = vadd.f32 %v201_v54, %v200_v53 }
 0x1a9   :  { %v203_v56 = vrot.slane %v202_v55, 1 }
 0x1ab   :  { %v204_v57 = vadd.f32 %v203_v56, %v202_v55 }
 0x1ad   :  { %205 = vst [vmem:[#allocation3] sm:$0xff] %v204_v57 }
 0x1ae   :  { %257 = shalt.err (!%p254_p4)
}
 0x1af   :  { %s258_s26 = scalar_lea.hbm %s329_s3, 128 }
 0x1b0   :  { %p259_p5 = scmp.ne.s32.totalorder %s329_s3, %s258_s26  ;;  %p262_p6 = scmp.lt.u32.totalorder %s258_s26, %s329_s3 }
 0x1b2   :  { %p264_p7 = pnand %p262_p6, %p259_p5 }
 0x1b4   :  { %267 = shalt.err (!%p264_p7)
}
 0x1b5   :  { %215 = dma.vmem_to_hbm [thread:$0]  %s213_s22, 128, %s329_s3, [#allocation4]  }
 0x1b6   :  { %268 = dma.done.wait [#allocation4], 128  }
 0x1b7   :  { %269 = vsyncadd [#allocation4], 4294967168 }
 0x1b8   :  { %219 = vsyncpa [#allocation4], 1 }

</bundles_post_ra>
